<compile_context>
chip_gen: v7x
topology: tpu7x:2x2x1
jax: 0.10.0
libtpu: 0.0.40
codegen_flags: <defaults>
</compile_context>

<pallas_src>
import jax
import jax.numpy as jnp
from jax.experimental import pallas as pl
from jax.experimental.pallas import tpu as pltpu


# ----------------------------- kernels --------------------------------------

def _pos_add_chw_kernel(x_ref, pos_ref, o_ref):
    # x/o: (bb, c_blk, HW) lane-dense block; pos: (c_blk, HW), already x.dtype.
    o_ref[...] = x_ref[...] + pos_ref[...][None]


def _pos_add_flat_kernel(x_ref, pos_ref, o_ref):
    # x/o: (bb, l_blk); pos: (1, l_blk) -> broadcasts over the batch sublanes.
    o_ref[...] = x_ref[...] + pos_ref[...]


# --------------------------- tiling helpers ----------------------------------

def _divisors(n):
    ds = set()
    i = 1
    while i * i <= n:
        if n % i == 0:
            ds.add(i)
            ds.add(n // i)
        i += 1
    return sorted(ds)


def _tpu_mem_params():
    """(block budget bytes, scoped-VMEM request cap bytes) keyed off the chip."""
    try:
        vmem_cap = pltpu.get_tpu_info().vmem_capacity_bytes
    except Exception:
        vmem_cap = 64 << 20                       # be conservative (v7x-sized)
    if vmem_cap >= (100 << 20):                   # v5e / v6e: 128 MiB physical VMEM
        return 8 << 20, 48 << 20                  # bigger blocks amortize overhead
    # v7x: 64 MiB per TensorCore -> smaller blocks, leave headroom for Mosaic scratch.
    return 4 << 20, 48 << 20


def _pick_blocks(B, N, unit_bytes, n_quantum, budget_bytes, *,
                 bb_quantum=1, target_steps=4, min_block_bytes=1 << 20):
    """Pick (bb, nb): batch block (divides B) and split-axis block (divides N).

    A block holds bb*nb*unit_bytes bytes. nb is kept n_quantum-aligned
    (or == N) for sublane/lane tiling; bb is kept bb_quantum-aligned
    (or 1 / == B). Targets: block <= budget, >= target_steps total grid steps
    (so both v7x cores get work and each still double-buffers), block >= ~1 MiB.
    """
    valid_nb = [d for d in _divisors(N) if d == N or d % n_quantum == 0]
    valid_nb.sort(reverse=True)
    valid_bb = [d for d in _divisors(B) if d == B or d == 1 or d % bb_quantum == 0]
    valid_bb.sort(reverse=True)

    # 1) largest split-axis block that fits the budget (with bb == 1).
    nb = valid_nb[-1]                             # smallest legal; caller checks VMEM
    for d in valid_nb:
        if d * unit_bytes <= budget_bytes:
            nb = d
            break

    # 2) coarsen the batch block while staying under budget and keeping steps.
    bb = 1
    for d in valid_bb:
        if d * nb * unit_bytes <= budget_bytes and (B // d) * (N // nb) >= target_steps:
            bb = d
            break

    # 3) too few steps? split the N axis further, but keep blocks >= ~1 MiB so
    #    per-step overhead stays negligible.
    steps = (B // bb) * (N // nb)
    if steps < target_steps:
        best_nb, best_steps = nb, steps
        for d in valid_nb:
            if d >= nb:
                continue
            if bb * d * unit_bytes < min_block_bytes:
                break                             # descending: the rest are smaller
            s = (B // bb) * (N // d)
            if s > best_steps:
                best_nb, best_steps = d, s
            if s >= target_steps:
                break
        nb = best_nb
    return bb, nb


# --------------------------- pallas_call paths -------------------------------

def _pallas_add_chw(x_flat, pos, budget_bytes, vmem_cap_req):
    """x_flat: (B, C, HW) with HW % 128 == 0; pos: (C, HW).
    Returns None if no tiling fits VMEM (caller falls back to XLA)."""
    B, C, HW = x_flat.shape
    itemsize = jnp.dtype(x_flat.dtype).itemsize
    pack = max(1, 32 // itemsize)                 # sublane packing: 8 f32/16 bf16/32 i8
    bb, c_blk = _pick_blocks(B, C, HW * itemsize, pack, budget_bytes)

    blk_bytes = bb * c_blk * HW * itemsize
    pos_blk_bytes = c_blk * HW * itemsize
    footprint = 4 * blk_bytes + 2 * pos_blk_bytes     # x + out double-buffered + pos
    if footprint > vmem_cap_req:
        return None
    vmem_limit = int(min(vmem_cap_req, max(16 << 20, footprint + footprint // 4)))

    grid = (C // c_blk, B // bb)                  # channel OUTER: pos stays resident
    cost = pl.CostEstimate(
        flops=B * C * HW,
        transcendentals=0,
        bytes_accessed=2 * B * C * HW * itemsize + C * HW * itemsize,
    )
    return pl.pallas_call(
        _pos_add_chw_kernel,
        out_shape=jax.ShapeDtypeStruct((B, C, HW), x_flat.dtype),
        grid=grid,
        in_specs=[
            pl.BlockSpec((bb, c_blk, HW), lambda c, b: (b, c, 0)),
            pl.BlockSpec((c_blk, HW), lambda c, b: (c, 0)),
        ],
        out_specs=pl.BlockSpec((bb, c_blk, HW), lambda c, b: (b, c, 0)),
        compiler_params=pltpu.CompilerParams(
            dimension_semantics=("parallel", "parallel"),
            vmem_limit_bytes=vmem_limit,
        ),
        cost_estimate=cost,
    )(x_flat, pos)


def _pallas_add_flat(x_flat, pos, budget_bytes, vmem_cap_req):
    """Lane-dense fallback for HW % 128 != 0 (e.g. 14x14, 7x7): flatten to
    (B, C*HW) and tile the last axis in multiples of 128.
    Returns None if no legal tiling fits VMEM."""
    B, C, HW = x_flat.shape
    L = C * HW
    itemsize = jnp.dtype(x_flat.dtype).itemsize
    x2 = x_flat.reshape(B, L)
    pos2 = pos.reshape(1, L)

    bb, l_blk = _pick_blocks(B, L, itemsize, 128, budget_bytes, bb_quantum=8)

    blk_bytes = bb * l_blk * itemsize
    pos_blk_bytes = l_blk * itemsize
    footprint = 4 * blk_bytes + 2 * pos_blk_bytes
    if footprint > vmem_cap_req:
        return None
    vmem_limit = int(min(vmem_cap_req, max(16 << 20, footprint + footprint // 4)))

    grid = (L // l_blk, B // bb)                  # lane axis OUTER: pos stays resident
    cost = pl.CostEstimate(
        flops=B * L,
        transcendentals=0,
        bytes_accessed=2 * B * L * itemsize + L * itemsize,
    )
    out = pl.pallas_call(
        _pos_add_flat_kernel,
        out_shape=jax.ShapeDtypeStruct((B, L), x2.dtype),
        grid=grid,
        in_specs=[
            pl.BlockSpec((bb, l_blk), lambda l, b: (b, l)),
            pl.BlockSpec((1, l_blk), lambda l, b: (0, l)),
        ],
        out_specs=pl.BlockSpec((bb, l_blk), lambda l, b: (b, l)),
        compiler_params=pltpu.CompilerParams(
            dimension_semantics=("parallel", "parallel"),
            vmem_limit_bytes=vmem_limit,
        ),
        cost_estimate=cost,
    )(x2, pos2)
    return out.reshape(B, C, HW)


# ------------------------------ wrapper --------------------------------------

def spatial_positional_encoder_learned(x, rows_weight, cols_weight, *,
                                       min_pallas_bytes=2 << 20):
    """Forward of SpatialPositionalEncoderLearned (channels_first=True).

    x: (B, C, H, W); rows_weight: (H, C//2); cols_weight: (W, C//2).
    Set min_pallas_bytes=0 to force the Pallas kernel even for tiny inputs.
    """
    B, C, H, W = x.shape
    assert C % 2 == 0, "dim must be even: rows/cols embeddings each use dim//2 channels"
    d2 = C // 2
    assert rows_weight.shape == (H, d2) and cols_weight.shape == (W, d2)
    HW = H * W

    # --- wrapper-side prep (tiny: C*H*W elements), matching the PyTorch concat:
    # channels [0, C/2) = cols_embedding (varies with w), [C/2, C) = rows (varies with h).
    cols_t = cols_weight.T.astype(x.dtype)              # (d2, W)
    rows_t = rows_weight.T.astype(x.dtype)              # (d2, H)
    pos_cols = jnp.tile(cols_t, (1, H))                 # (d2, HW): [c, h*W+w] = cols[w, c]
    pos_rows = jnp.repeat(rows_t, W, axis=1)            # (d2, HW): [c, h*W+w] = rows[h, c]
    pos = jnp.concatenate([pos_cols, pos_rows], axis=0)  # (C, HW), already x.dtype

    x_flat = x.reshape(B, C, HW)
    itemsize = jnp.dtype(x.dtype).itemsize

    # Tiny inputs: custom-call launch + per-step overhead dominate; fused XLA add wins.
    if B * C * HW * itemsize < min_pallas_bytes:
        return (x_flat + pos[None]).reshape(B, C, H, W)

    budget_bytes, vmem_cap_req = _tpu_mem_params()
    if HW % 128 == 0:
        out = _pallas_add_chw(x_flat, pos, budget_bytes, vmem_cap_req)
    else:
        out = _pallas_add_flat(x_flat, pos, budget_bytes, vmem_cap_req)
    if out is None:                                      # pathological shape: stay correct
        return (x_flat + pos[None]).reshape(B, C, H, W)
    return out.reshape(B, C, H, W)


# ------------------------------ reference ------------------------------------

def _reference(x, rows_weight, cols_weight):
    # Pure-JAX transcription of the PyTorch forward (channels_first=True).
    B, C, H, W = x.shape
    d2 = C // 2
    x_emb = cols_weight                                   # (W, d2)
    y_emb = rows_weight                                   # (H, d2)
    pos = jnp.concatenate(
        [jnp.broadcast_to(x_emb[None, :, :], (H, W, d2)),
         jnp.broadcast_to(y_emb[:, None, :], (H, W, d2))],
        axis=2)                                            # (H, W, C)
    pos = jnp.transpose(pos, (2, 0, 1))                    # (C, H, W)
    return x + pos[None].astype(x.dtype)


if __name__ == "__main__":
    # Module config: img_size=16 -> H=W=16, dim=32, channels_first=True.
    B, dim, H, W = 2, 32, 16, 16

    key = jax.random.PRNGKey(0)
    kx, kr, kc = jax.random.split(key, 3)
    x = jax.random.normal(kx, (B, dim, H, W), dtype=jnp.float32)
    # nn.init.normal_ -> standard normal, deterministic here via PRNGKey(0).
    rows_weight = jax.random.normal(kr, (H, dim // 2), dtype=jnp.float32)
    cols_weight = jax.random.normal(kc, (W, dim // 2), dtype=jnp.float32)

    ref = _reference(x, rows_weight, cols_weight)

    # Force the Pallas path at this small demo shape (normally it would take the
    # fused-XLA fallback below ~2 MiB of traffic).
    out = spatial_positional_encoder_learned(
        x, rows_weight, cols_weight, min_pallas_bytes=0)
    out = jax.block_until_ready(out)
    assert out.shape == x.shape and out.dtype == x.dtype
    assert jnp.allclose(out, ref, atol=1e-6, rtol=1e-6)

    # The default (tiny-input XLA fallback) path must agree as well.
    out_default = jax.block_until_ready(
        spatial_positional_encoder_learned(x, rows_weight, cols_weight))
    assert jnp.allclose(out_default, ref, atol=1e-6, rtol=1e-6)

    print("KERNEL_OK")
</pallas_src>

<mosaic_0001>
module attributes {stable_mosaic.version = 11 : i64} {
  func.func @_pos_add_chw_kernel(%arg0: i32, %arg1: i32, %arg2: memref<1x32x256xf32, #tpu.memory_space<vmem>>, %arg3: memref<32x256xf32, #tpu.memory_space<vmem>>, %arg4: memref<1x32x256xf32, #tpu.memory_space<vmem>>) attributes {dimension_semantics = [#tpu.dimension_semantics<parallel>, #tpu.dimension_semantics<parallel>], iteration_bounds = array<i64: 1, 2>, scalar_prefetch = 0 : i64, scratch_operands = 0 : i64, tpu.core_type = #tpu.core_type<tc>, window_params = [{transform_indices = @transform_0, window_bounds = array<i64: 1, 32, 256>}, {transform_indices = @transform_1, window_bounds = array<i64: 32, 256>}, {transform_indices = @transform_2, window_bounds = array<i64: 1, 32, 256>}]} {
    %c0 = arith.constant 0 : index
    %c0_0 = arith.constant 0 : index
    %c0_1 = arith.constant 0 : index
    %0 = vector.load %arg2[%c0, %c0_0, %c0_1] : memref<1x32x256xf32, #tpu.memory_space<vmem>>, vector<1x32x256xf32>
    %c0_2 = arith.constant 0 : index
    %c0_3 = arith.constant 0 : index
    %1 = vector.load %arg3[%c0_2, %c0_3] : memref<32x256xf32, #tpu.memory_space<vmem>>, vector<32x256xf32>
    %2 = vector.shape_cast %1 : vector<32x256xf32> to vector<1x32x256xf32>
    %3 = arith.addf %0, %2 : vector<1x32x256xf32>
    %c0_4 = arith.constant 0 : index
    %c0_5 = arith.constant 0 : index
    %c0_6 = arith.constant 0 : index
    %4 = vector.load %arg4[%c0_4, %c0_5, %c0_6] : memref<1x32x256xf32, #tpu.memory_space<vmem>>, vector<1x32x256xf32>
    tpu.vector_store %arg4[%c0_4, %c0_5, %c0_6], %3 {strides = array<i32>} : memref<1x32x256xf32, #tpu.memory_space<vmem>>, vector<1x32x256xf32>,
    return
  }
  func.func @transform_0(%arg0: i32, %arg1: i32) -> (i32, i32, i32) {
    %c0_i32 = arith.constant 0 : i32
    %c0_i32_0 = arith.constant 0 : i32
    return %arg1, %arg0, %c0_i32 : i32, i32, i32
  }
  func.func @transform_1(%arg0: i32, %arg1: i32) -> (i32, i32) {
    %c0_i32 = arith.constant 0 : i32
    %c0_i32_0 = arith.constant 0 : i32
    return %arg0, %c0_i32 : i32, i32
  }
  func.func @transform_2(%arg0: i32, %arg1: i32) -> (i32, i32, i32) {
    %c0_i32 = arith.constant 0 : i32
    %c0_i32_0 = arith.constant 0 : i32
    return %arg1, %arg0, %c0_i32 : i32, i32, i32
  }
}

</mosaic_0001>

<bundles_post_ra>
// kernel: tpu_custom_call.1
= control target key start
LH: loop header
LB: loop body
LE: loop exit
PB: predicated region body
PF: predicated region fallthrough
CT: control target
= control target key end

     0   :  { %7 = vsyncpa [#allocation3], 0  ;;  %s855_s0 = inlined_call_operand.hbm [shape: f32[2,32,256], index: 0, kind: input, shape index: {}]   ;;  %s856_s1 = inlined_call_operand.hbm [shape: f32[32,256], index: 1, kind: input, shape index: {}]   ;;  %s857_s2 = inlined_call_operand.hbm [shape: f32[2,32,256], index: 2, kind: output, shape index: {}]  }
   0x1   :  { %9 = vsyncpa [#allocation3 + $0x1], 0 }
   0x2   :  { %10 = vsyncpa [#allocation6], 0 }
   0x3   :  { %11 = vsyncpa [#allocation4], 0 }
   0x4   :  { %13 = vsyncpa [#allocation4 + $0x1], 0  ;;  %s620_s9 = smov 0   ;;  %s622_s10 = smov 0  }
   0x5   :  { %s624_s11 = smov 0   ;;  %s626_s12 = smov 0  }
   0x6   :  { %s628_s13 = smov 0   ;;  %s630_s14 = smov 0  }
   0x7 LB: > { %s356_s15 = sadd.s32 4294967295, %s596_s14   ;;  %s357_s16 = sadd.s32 4294967294, %s596_s14   ;;  %s596_s14 = sphi %s630_s14, %s19_s14   ;;  %s592_s13 = sphi %s628_s13, %s881_s13   ;;  %s588_s12 = sphi %s626_s12, %s880_s12   ;;  %s584_s11 = sphi %s624_s11, %s879_s11   ;;  %s580_s10 = sphi %s622_s10, %s878_s10   ;;  %s576_s9 = sphi %s620_s9, %s877_s9  }
   0x8   : > { %p53_p0 = scmp.ne.s32.totalorder %s580_s10, %s576_s9  ;;  %p654_p1 = scmp.eq.s32.totalorder %s356_s15, 0 }
   0x9   : > { %p658_p2 = scmp.eq.s32.totalorder %s356_s15, 1  ;;  %p111_p3 = scmp.eq.s32.totalorder %s357_s16, 1 }
   0xa   : > { %s862_s17 = scalar_select %p654_p1, 1, 0 }
   0xb   : > { %s863_s18 = scalar_select %p658_p2, 1, 0 }
   0xc   : > { %p664_p4 = por %p654_p1, %p53_p0  ;;  %p358_p5 = scmp.ge.s32.totalorder %s596_s14, 1 }
   0xd   : > { %p669_p6 = por %p111_p3, %p53_p0  ;;  %p118_p7 = scmp.lt.s32.totalorder %s596_s14, 3 }
   0xe   : > { %s864_s19 = scalar_select %p664_p4, 1, 0 }
   0xf   : > { %s865_s20 = scalar_select %p669_p6, 1, 0 }
  0x10   : > { %p674_p8 = pnand %p358_p5, %p118_p7  ;;  %s598_s22 = smov [#allocation5]  }
  0x11   : > { %s134_s23 = sshll.u32 %s598_s22, 4  ;;  %s28_s25 = sadd.s32 1, %s592_s13  ;;  %s135_s23 = int_to_ptr.vmem [resolvable:$true] %s134_s23 }
  0x12   : > { %s866_s21 = scalar_select %p674_p8, 1, 0 }
  0x13   : > { %p383_p9 = pneg %p674_p8  ;;  %s452_s28 = scalar_lea.hbm %s856_s1, 1024 }
  0x14   : > { %p453_p12 = scmp.ne.s32.totalorder %s856_s1, %s452_s28  ;;  %p459_p5 = scmp.lt.u32.totalorder %s452_s28, %s856_s1 }
  0x15   : > { %p683_p11 = pnand %p383_p9, %p654_p1 }
  0x17   : > { %p454_p13 = pneg %p683_p11 }
  0x19   : > { %p455_p0 = pnand %p454_p13, %p453_p12 }
  0x1b   : > { %p456_p3 = pneg %p455_p0 }
  0x1d   : > { %p461_p7 = pnand %p459_p5, %p456_p3 }
  0x1f   : > { %464 = shalt.err (!%p461_p7)
}
  0x20   : > { %s465_s5 = scalar_lea.vmem %s135_s23, 1024  ;;  %p473_p1 = scmp.lt.s32.totalorder %s135_s23, %s135_s23 }
  0x21   : > { %p466_p9 = scmp.ne.s32.totalorder %s135_s23, %s465_s5  ;;  %p474_p4 = scmp.lt.s32.totalorder %s465_s5, %s465_s5 }
  0x23   : > { %p468_p10 = pnand %p466_p9, %p454_p13  ;;  %p475_p8 = por %p474_p4, %p473_p1 }
  0x25   : > { %p469_p6 = pneg %p468_p10 }
  0x27   : > { %p476_p2 = pnand %p475_p8, %p469_p6 }
  0x29   : > { %479 = shalt.err (!%p476_p2)
}
  0x2a   : > { %s599_s6 = smov 256   ;;  %s600_s7 = smov 16  }
  0x2b   : > { %386 = dma.hbm_to_vmem [thread:$0]  (!%p683_p11), %s856_s1, 1024, %s135_s23, [#allocation6], %s599_s6, %s599_s6, %s600_s7  }
  0x2c   : > { %p29_p1 = scmp.ge.s32.totalorder %s28_s25, 2  ;;  %s40_s16 = sadd.s32 1, %s584_s11 }
  0x2d   : > { %p47_p2 = scmp.ne.s32.totalorder %s584_s11, %s580_s10  ;;  %p48_p4 = scmp.eq.s32.totalorder %s596_s14, 0 }
  0x2e   : > { %s883_s25 = smov (%p29_p1, %s28_s25), 0  ;;  %p869_p8 = scmp.ne.s32.totalorder %s863_s18, 0 }
  0x2f   : > { %p713_p6 = por %p48_p4, %p47_p2  ;;  %s35_s26 = ssub.s32 %s592_s13, %s883_s25 }
  0x30   : > { %p719_p10 = por %p869_p8, %p47_p2  ;;  %p396_p12 = scmp.lt.s32.totalorder %s596_s14, 2 }
  0x31   : > { %p38_p11 = scmp.eq.s32.totalorder %s35_s26, 0  ;;  %s148_s23 = sand.u32 1, %s584_s11  }
  0x32   : > { %s361_s27 = sshll.u32 %s148_s23, 6  ;;  %s373_s29 = sshll.u32 %s592_s13, 10 }
  0x33   : > { %s728_s28 = scalar_select %p38_p11, %s584_s11, %s40_s16  }
  0x34   : > { %s734_s4 = scalar_lea.hbm %s855_s0, %s373_s29  ;;  %s152_s18 = scalar_lea.vmem [#allocation2], %s361_s27 }
  0x35   : > { %s162_s5 = sshll.u32 %s152_s18, 4  ;;  %p740_p13 = pnand %p396_p12, %p713_p6  ;;  %s736_s5 = int_to_ptr.vmem [resolvable:$true] %s162_s5 }
  0x36   : > { %s744_s15 = scalar_lea.sflag [#allocation3], %s148_s23  ;;  %s480_s16 = scalar_lea.hbm %s734_s4, 1024 }
  0x37   : > { %p481_p0 = scmp.ne.s32.totalorder %s734_s4, %s480_s16  ;;  %p482_p3 = pneg %p740_p13 }
  0x38   : > { %s485_s22 = scalar_lea.hbm %s855_s0, 2048  ;;  %p486_p9 = scmp.lt.u32.totalorder %s734_s4, %s855_s0 }
  0x39   : > { %p483_p5 = pnand %p482_p3, %p481_p0  ;;  %p487_p1 = scmp.lt.u32.totalorder %s485_s22, %s480_s16 }
  0x3a   : > { %p489_p4 = scmp.lt.u32.totalorder %s480_s16, %s734_s4 }
  0x3b   : > { %p484_p7 = pneg %p483_p5  ;;  %p488_p2 = por %p487_p1, %p486_p9 }
  0x3d   : > { %p490_p6 = por %p489_p4, %p488_p2 }
  0x3f   : > { %p491_p8 = pnand %p490_p6, %p484_p7 }
  0x41   : > { %494 = shalt.err (!%p491_p8)
}
  0x42   : > { %s495_s23 = scalar_lea.vmem %s736_s5, 1024  ;;  %s601_s3 = smov [#allocation2]  }
  0x43   : > { %p496_p12 = scmp.ne.s32.totalorder %s736_s5, %s495_s23  ;;  %s500_s18 = sshll.u32 %s601_s3, 4  ;;  %s501_s18 = int_to_ptr.vmem [resolvable:$false] %s500_s18 }
  0x44   : > { %s502_s26 = scalar_lea.vmem %s501_s18, 2048  ;;  %p503_p5 = scmp.lt.s32.totalorder %s736_s5, %s501_s18 }
  0x45   : > { %p498_p11 = pnand %p496_p12, %p482_p3  ;;  %p504_p9 = scmp.lt.s32.totalorder %s502_s26, %s495_s23 }
  0x47   : > { %p499_p0 = pneg %p498_p11  ;;  %p505_p1 = por %p504_p9, %p503_p5 }
  0x49   : > { %p506_p2 = pnand %p505_p1, %p499_p0 }
  0x4b   : > { %509 = shalt.err (!%p506_p2)
}
  0x4c   : > { %390 = dma.hbm_to_vmem [thread:$0]  (!%p740_p13), %s734_s4, 1024, %s736_s5, %s744_s15, %s599_s6, %s599_s6, %s600_s7  }
  0x4d   : > { %p872_p3 = scmp.ne.s32.totalorder %s866_s21, 0 }
  0x4e   : > { %s778_s16 = sand.u32 (!%p872_p3), 1, %s580_s10   ;;  %p873_p7 = scmp.ne.s32.totalorder (!%p872_p3), %s864_s19, 0 }
  0x4f   : > { %174 = sbr.rel (%p872_p3) target bundleno = 116 (0x74), region = 28  ;;  %s365_s27 = sshll.u32 (!%p872_p3), %s778_s16, 6 }
  0x50   : > { %s177_s22 = scalar_lea.sflag (!%p872_p3), [#allocation3], %s778_s16  ;;  %s782_s29 = scalar_lea.vmem (!%p872_p3), [#allocation2], %s365_s27 }
  0x56   : > { %563 = dma.done.wait (%p873_p7), %s177_s22, 1024  }
  0x57   : > { %565 = vsyncadd (%p873_p7), %s177_s22, 4294966272  ;;  %p874_p13 = scmp.ne.s32.totalorder %s862_s17, 0 }
  0x59   : > { %567 = dma.done.wait (%p874_p13), [#allocation6], 1024  }
  0x5a   : > { %569 = vsyncadd (%p874_p13), [#allocation6], 4294966272  ;;  %v208_v0 = vld [vmem:[%s782_s29] sm:$0xff]  ;;  %v209_v2 = vld [vmem:[%s782_s29 + $0x8] sm:$0xff]  ;;  %s204_s19 = scalar_lea.vmem [#allocation7], %s365_s27  ;;  %s374_s17 = sshll.u32 %s588_s12, 10 }
  0x5b   : > { %v216_v1 = vld [vmem:[#allocation5] sm:$0xff]  ;;  %v217_v4 = vld [vmem:[#allocation5 + $0x8] sm:$0xff]  ;;  %v210_v5 = vld [vmem:[%s782_s29 + $0x10] sm:$0xff]  ;;  %s257_s21 = sshll.u32 %s204_s19, 4  ;;  %s806_s7 = scalar_lea.hbm %s857_s2, %s374_s17  ;;  %s801_s21 = int_to_ptr.vmem [resolvable:$true] %s257_s21 }
  0x5c   : > { %v224_v3 = vadd.f32 %v216_v1, %v208_v0  ;;  %v218_v6 = vld [vmem:[#allocation5 + $0x10] sm:$0xff]  ;;  %v225_v7 = vadd.f32 %v217_v4, %v209_v2  ;;  %v211_v9 = vld [vmem:[%s782_s29 + $0x18] sm:$0xff]  ;;  %v212_v11 = vld [vmem:[%s782_s29 + $0x20] sm:$0xff]  ;;  %s241_s4 = scalar_lea.sflag [#allocation4], %s778_s16  ;;  %s510_s5 = scalar_lea.vmem %s801_s21, 1024 }
  0x5d   : > { %v226_v8 = vadd.f32 %v218_v6, %v210_v5  ;;  %v219_v10 = vld [vmem:[#allocation5 + $0x18] sm:$0xff]  ;;  %v220_v13 = vld [vmem:[#allocation5 + $0x20] sm:$0xff]  ;;  %v213_v14 = vld [vmem:[%s782_s29 + $0x28] sm:$0xff]  ;;  %p511_p4 = scmp.ne.s32.totalorder %s801_s21, %s510_s5  ;;  %s602_s8 = smov [#allocation7]  }
  0x5e   : > { %232 = vst [vmem:[%s204_s19] sm:$0xff] %v224_v3  ;;  %v227_v12 = vadd.f32 %v219_v10, %v211_v9  ;;  %v221_v15 = vld [vmem:[#allocation5 + $0x28] sm:$0xff]  ;;  %233 = vst [vmem:[%s204_s19 + $0x8] sm:$0xff] %v225_v7  ;;  %v228_v16 = vadd.f32 %v220_v13, %v212_v11  ;;  %v214_v18 = vld [vmem:[%s782_s29 + $0x30] sm:$0xff]  ;;  %s514_s15 = sshll.u32 %s602_s8, 4  ;;  %s515_s15 = int_to_ptr.vmem [resolvable:$false] %s514_s15 }
  0x5f   : > { %234 = vst [vmem:[%s204_s19 + $0x10] sm:$0xff] %v226_v8  ;;  %v229_v17 = vadd.f32 %v221_v15, %v213_v14  ;;  %v222_v19 = vld [vmem:[#allocation5 + $0x30] sm:$0xff]  ;;  %v215_v20 = vld [vmem:[%s782_s29 + $0x38] sm:$0xff]  ;;  %p512_p6 = pnand %p511_p4, %p719_p10  ;;  %s516_s30 = scalar_lea.vmem %s515_s15, 2048 }
  0x60   : > { %235 = vst [vmem:[%s204_s19 + $0x18] sm:$0xff] %v227_v12  ;;  %v230_v21 = vadd.f32 %v222_v19, %v214_v18  ;;  %v223_v22 = vld [vmem:[#allocation5 + $0x38] sm:$0xff]  ;;  %236 = vst [vmem:[%s204_s19 + $0x20] sm:$0xff] %v228_v16  ;;  %p517_p12 = scmp.lt.s32.totalorder %s801_s21, %s515_s15  ;;  %p518_p11 = scmp.lt.s32.totalorder %s516_s30, %s510_s5 }
  0x61   : > { %237 = vst [vmem:[%s204_s19 + $0x28] sm:$0xff] %v229_v17  ;;  %v231_v23 = vadd.f32 %v223_v22, %v215_v20  ;;  %p513_p8 = pneg %p512_p6 }
  0x62   : > { %238 = vst [vmem:[%s204_s19 + $0x30] sm:$0xff] %v230_v21  ;;  %p519_p0 = por %p518_p11, %p517_p12 }
  0x63   : > { %239 = vst [vmem:[%s204_s19 + $0x38] sm:$0xff] %v231_v23 }
  0x64   : > { %p520_p5 = pnand %p519_p0, %p513_p8 }
  0x66   : > { %523 = shalt.err (!%p520_p5)
}
  0x67   : > { %s524_s23 = scalar_lea.hbm %s806_s7, 1024  ;;  %s528_s26 = scalar_lea.hbm %s857_s2, 2048 }
  0x68   : > { %p525_p9 = scmp.ne.s32.totalorder %s806_s7, %s524_s23  ;;  %p529_p3 = scmp.lt.u32.totalorder %s806_s7, %s857_s2 }
  0x69   : > { %p530_p7 = scmp.lt.u32.totalorder %s528_s26, %s524_s23  ;;  %p532_p4 = scmp.lt.u32.totalorder %s524_s23, %s806_s7 }
  0x6a   : > { %p526_p1 = pnand %p525_p9, %p719_p10 }
  0x6b   : > { %p531_p13 = por %p530_p7, %p529_p3 }
  0x6c   : > { %p527_p2 = pneg %p526_p1 }
  0x6d   : > { %p533_p6 = por %p532_p4, %p531_p13 }
  0x6f   : > { %p534_p8 = pnand %p533_p6, %p527_p2 }
  0x71   : > { %537 = shalt.err (!%p534_p8)
}
  0x72   : > { %s603_s29 = smov 256   ;;  %s604_s19 = smov 16  }
  0x73   : > { %381 = dma.vmem_to_hbm [thread:$0]  (%p719_p10), %s801_s21, 1024, %s806_s7, %s241_s4, %s603_s29, %s603_s29, %s604_s19  }
  0x74 PF: > { %s272_s17 = sand.u32 1, %s576_s9   ;;  %p875_p12 = scmp.ne.s32.totalorder %s865_s20, 0 }
  0x75   : > { %p876_p11 = scmp.ge.s32.totalorder %s596_s14, 2  ;;  %s273_s12 = scalar_lea.sflag [#allocation4], %s272_s17 }
  0x77   : > { %p392_p0 = pnand %p876_p11, %p875_p12 }
  0x79   : > { %571 = dma.done.wait (!%p392_p0), %s273_s12, 1024  }
  0x7a   : > { %573 = vsyncadd (!%p392_p0), %s273_s12, 4294966272  ;;  %s19_s14 = sadd.s32 1, %s596_s14   ;;  %s877_s9 = smov %s580_s10 }
  0x7b   : > { %p16_p5 = scmp.ge.s32.totalorder %s19_s14, 4   ;;  %s878_s10 = smov %s584_s11 }
  0x7c   : > { %s879_s11 = smov %s728_s28  ;;  %s880_s12 = smov %s592_s13 }
  0x7d   : > { %s881_s13 = smov %s883_s25  ;;  %18 = sbr.rel (!%p16_p5) target bundleno = 7 (0x7), region = 78 }
  0x84   :  { %278 = vsyncpa [#allocation3], 1 }
  0x85   :  { %280 = vsyncpa [#allocation3 + $0x1], 1 }
  0x86   :  { %281 = vsyncpa [#allocation6], 1 }
  0x87   :  { %282 = vsyncpa [#allocation4], 1 }
  0x88   :  { %284 = vsyncpa [#allocation4 + $0x1], 1 }

</bundles_post_ra>
